<compile_context>
chip_gen: v5e
topology: v5e:2x2
jax: 0.10.0
libtpu: 0.0.40
codegen_flags: <defaults>
</compile_context>

<pallas_src>
import jax
import jax.numpy as jnp
from jax.experimental import pallas as pl
from jax.experimental.pallas import tpu as pltpu


def mixconv_kernel(w_ref, b_ref, x_ref, o_ref):
    # w_ref: (Bblk, fout, fin) f32   b_ref: (Bblk, fout, 1) f32
    # x_ref: (Bblk, fin, hw_t) f32   o_ref: (Bblk, fout, hw_t)
    acc = jnp.einsum(
        "bfi,bih->bfh", w_ref[...], x_ref[...],
        preferred_element_type=jnp.float32)
    o_ref[...] = (acc + b_ref[...]).astype(o_ref.dtype)


def _vmem_config():
    """Generation-aware (pipeline-tile budget, vmem_limit_bytes)."""
    cap = 128 << 20
    try:
        cap = getattr(pltpu.get_tpu_info(), "vmem_capacity_bytes", cap)
    except Exception:
        pass
    if cap <= (64 << 20):          # v7x: 64 MiB physical VMEM per TC
        return 26 << 20, 36 << 20
    return 44 << 20, 64 << 20      # v5e / v6e: 128 MiB physical VMEM


def _choose_tiling(B, fin, fout, HW_pad, budget, out_itemsize):
    """Pick (Bblk, hw_tile): lane-dense, fits the double-buffered VMEM budget,
    prefers >=2 grid steps with an even extent (v7x dual-TC), then largest tile."""

    def step_bytes(bblk, hwt):
        x_b = bblk * fin * hwt * 4
        o_b = bblk * fout * hwt * out_itemsize
        w_b = bblk * fout * fin * 4
        bi_b = bblk * fout * 4
        return 2 * (x_b + o_b + w_b + bi_b)     # double-buffered pipeline

    # Lane-dense spatial tiles: prefer 2048/1024/512 (>=85% of HBM roofline), 128 fallback.
    hw_cands = [t for t in (2048, 1024, 512, 256, 128) if HW_pad % t == 0]
    if HW_pad <= 2048 and HW_pad not in hw_cands:
        hw_cands.insert(0, HW_pad)
    b_divs = [d for d in range(B, 0, -1) if B % d == 0]

    best = None
    for hwt in hw_cands:
        for bblk in b_divs:
            if step_bytes(bblk, hwt) > budget:
                continue
            gb, gh = B // bblk, HW_pad // hwt
            multi = (gb * gh) >= 2                       # keep both v7x TCs busy
            even = (gh % 2 == 0) or (gb % 2 == 0)        # even split across 2 TCs
            score = (multi, even, bblk * hwt)            # then amortize per-step overhead
            if best is None or score > best[0]:
                best = (score, bblk, hwt)
    if best is None:
        raise ValueError(
            f"MixConv tile does not fit the VMEM budget ({budget} bytes) even at "
            f"bblk=1, hw_t=128 (fin={fin}, fout={fout}).")
    return best[1], best[2]


def mixconv_forward(x, lat, dyna_w, dyna_b, kernel_mix, bias_mix, out_dtype=None):
    """x: (B, fin, H, W) f32, lat: (B, lat_size) f32.

    dyna_w: (n_mix, lat_size), dyna_b: (n_mix,)          -- nn.Linear(lat_size, n_mix)
    kernel_mix: (1, n_mix, fout, fin, 1, 1)
    bias_mix:   (1, n_mix, fout, 1, 1)
    out_dtype: optional output dtype (e.g. bf16 to halve writeback traffic); default x.dtype.
    """
    B, fin, H, W = x.shape
    _, n_mix, fout, fin_k, _, _ = kernel_mix.shape
    assert fin_k == fin
    HW = H * W
    out_dtype = x.dtype if out_dtype is None else out_dtype

    # ---- hoisted dynamic mixing (tiny, done once in XLA, f32 throughout) ----
    ks = lat @ dyna_w.T + dyna_b[None, :]                                     # (B, n_mix)
    w_mix = (ks @ kernel_mix.reshape(n_mix, fout * fin)).reshape(B, fout, fin)
    b_mix = (ks @ bias_mix.reshape(n_mix, fout)).reshape(B, fout, 1)          # (B, fout, 1)

    # ---- layout prep: free reshape, pad spatial axis to a lane-dense multiple of 128 ----
    x2 = x.reshape(B, fin, HW)                 # no dtype cast: f32 end-to-end
    HW_pad = ((HW + 127) // 128) * 128
    if HW_pad != HW:
        x2 = jnp.pad(x2, ((0, 0), (0, 0), (0, HW_pad - HW)))

    budget, vmem_limit = _vmem_config()
    bblk, hw_t = _choose_tiling(B, fin, fout, HW_pad, budget,
                                jnp.dtype(out_dtype).itemsize)
    grid = (B // bblk, HW_pad // hw_t)

    out = pl.pallas_call(
        mixconv_kernel,
        out_shape=jax.ShapeDtypeStruct((B, fout, HW_pad), out_dtype),
        grid_spec=pltpu.PrefetchScalarGridSpec(
            num_scalar_prefetch=0,
            grid=grid,
            in_specs=[
                pl.BlockSpec((bblk, fout, fin), lambda b, h: (b, 0, 0)),   # mixed weights
                pl.BlockSpec((bblk, fout, 1), lambda b, h: (b, 0, 0)),     # mixed bias
                pl.BlockSpec((bblk, fin, hw_t), lambda b, h: (b, 0, h)),   # x tile
            ],
            out_specs=pl.BlockSpec((bblk, fout, hw_t), lambda b, h: (b, 0, h)),
        ),
        compiler_params=pltpu.CompilerParams(
            dimension_semantics=("parallel", "parallel"),
            vmem_limit_bytes=vmem_limit,
        ),
    )(w_mix, b_mix, x2)

    if HW_pad != HW:
        out = out[:, :, :HW]
    return out.reshape(B, fout, H, W)


def reference_forward(x, lat, dyna_w, dyna_b, kernel_mix, bias_mix):
    B, fin, H, W = x.shape
    _, n_mix, fout, _, _, _ = kernel_mix.shape
    ks = lat @ dyna_w.T + dyna_b                                        # (B, n_mix)
    w = jnp.einsum("bm,mfi->bfi", ks, kernel_mix.reshape(n_mix, fout, fin))
    bias = jnp.einsum("bm,mf->bf", ks, bias_mix.reshape(n_mix, fout))
    return jnp.einsum("bfi,bihw->bfhw", w, x) + bias[:, :, None, None]


if __name__ == "__main__":
    # small shapes consistent with the module
    B, fin, fout, H, W = 2, 4, 8, 16, 16
    lat_size, n_mix = 32, 8

    key = jax.random.PRNGKey(0)
    k1, k2, k3, k4, k5, k6 = jax.random.split(key, 6)

    x = jax.random.normal(k1, (B, fin, H, W), jnp.float32)
    lat = jax.random.normal(k2, (B, lat_size), jnp.float32)

    # deterministic parameter init (xavier-normal-style scales)
    std_k = (2.0 / (n_mix * fout * fin + fout * fin)) ** 0.5
    kernel_mix = std_k * jax.random.normal(k3, (1, n_mix, fout, fin, 1, 1), jnp.float32)
    std_b = (2.0 / (n_mix + fout)) ** 0.5
    bias_mix = std_b * jax.random.normal(k4, (1, n_mix, fout, 1, 1), jnp.float32)
    std_d = (2.0 / (lat_size + n_mix)) ** 0.5
    dyna_w = std_d * jax.random.normal(k5, (n_mix, lat_size), jnp.float32)
    dyna_b = 0.01 * jax.random.normal(k6, (n_mix,), jnp.float32)

    out = mixconv_forward(x, lat, dyna_w, dyna_b, kernel_mix, bias_mix)
    out = jax.block_until_ready(out)

    ref = reference_forward(x, lat, dyna_w, dyna_b, kernel_mix, bias_mix)
    assert out.shape == (B, fout, H, W)
    # f32 inputs end-to-end; residual difference only from MXU default matmul precision.
    assert jnp.allclose(out, ref, atol=1e-2, rtol=1e-2), float(jnp.max(jnp.abs(out - ref)))

    print("KERNEL_OK")
</pallas_src>

<mosaic_0001>
module attributes {stable_mosaic.version = 11 : i64} {
  func.func @mixconv_kernel(%arg0: i32, %arg1: i32, %arg2: memref<1x8x4xf32, #tpu.memory_space<vmem>>, %arg3: memref<1x8x1xf32, #tpu.memory_space<vmem>>, %arg4: memref<1x4x256xf32, #tpu.memory_space<vmem>>, %arg5: memref<1x8x256xf32, #tpu.memory_space<vmem>>) attributes {dimension_semantics = [#tpu.dimension_semantics<parallel>, #tpu.dimension_semantics<parallel>], iteration_bounds = array<i64: 2, 1>, scalar_prefetch = 0 : i64, scratch_operands = 0 : i64, tpu.core_type = #tpu.core_type<tc>, window_params = [{transform_indices = @transform_0, window_bounds = array<i64: 1, 8, 4>}, {transform_indices = @transform_1, window_bounds = array<i64: 1, 8, 1>}, {transform_indices = @transform_2, window_bounds = array<i64: 1, 4, 256>}, {transform_indices = @transform_3, window_bounds = array<i64: 1, 8, 256>}]} {
    %c0 = arith.constant 0 : index
    %c0_0 = arith.constant 0 : index
    %c0_1 = arith.constant 0 : index
    %0 = vector.load %arg2[%c0, %c0_0, %c0_1] : memref<1x8x4xf32, #tpu.memory_space<vmem>>, vector<1x8x4xf32>
    %c0_2 = arith.constant 0 : index
    %c0_3 = arith.constant 0 : index
    %c0_4 = arith.constant 0 : index
    %1 = vector.load %arg4[%c0_2, %c0_3, %c0_4] : memref<1x4x256xf32, #tpu.memory_space<vmem>>, vector<1x4x256xf32>
    "tpu.trace_start"() <{level = 10 : i32, message = "bfi,bih->bfh"}> : () -> ()
    %cst = arith.constant dense<0.000000e+00> : vector<1x8x256xf32>
    %2 = tpu.matmul %0, %1, %cst {dimension_numbers = #tpu.dot_dimension_numbers<[2], [1], [1], [2], [0, 0, 0, 1, 1, 2], [0], [0]>} : vector<1x8x4xf32>, vector<1x4x256xf32>, vector<1x8x256xf32> -> vector<1x8x256xf32>
    "tpu.trace_stop"() : () -> ()
    %c0_5 = arith.constant 0 : index
    %c0_6 = arith.constant 0 : index
    %c0_7 = arith.constant 0 : index
    %3 = vector.load %arg3[%c0_5, %c0_6, %c0_7] : memref<1x8x1xf32, #tpu.memory_space<vmem>>, vector<1x8x1xf32>
    %4 = vector.broadcast %3 : vector<1x8x1xf32> to vector<1x8x256xf32>
    %5 = arith.addf %2, %4 : vector<1x8x256xf32>
    %c0_8 = arith.constant 0 : index
    %c0_9 = arith.constant 0 : index
    %c0_10 = arith.constant 0 : index
    %6 = vector.load %arg5[%c0_8, %c0_9, %c0_10] : memref<1x8x256xf32, #tpu.memory_space<vmem>>, vector<1x8x256xf32>
    tpu.vector_store %arg5[%c0_8, %c0_9, %c0_10], %5 {strides = array<i32>} : memref<1x8x256xf32, #tpu.memory_space<vmem>>, vector<1x8x256xf32>,
    return
  }
  func.func @transform_0(%arg0: i32, %arg1: i32) -> (i32, i32, i32) {
    %c0_i32 = arith.constant 0 : i32
    %c0_i32_0 = arith.constant 0 : i32
    %c0_i32_1 = arith.constant 0 : i32
    return %arg0, %c0_i32, %c0_i32_0 : i32, i32, i32
  }
  func.func @transform_1(%arg0: i32, %arg1: i32) -> (i32, i32, i32) {
    %c0_i32 = arith.constant 0 : i32
    %c0_i32_0 = arith.constant 0 : i32
    %c0_i32_1 = arith.constant 0 : i32
    return %arg0, %c0_i32, %c0_i32_0 : i32, i32, i32
  }
  func.func @transform_2(%arg0: i32, %arg1: i32) -> (i32, i32, i32) {
    %c0_i32 = arith.constant 0 : i32
    %c0_i32_0 = arith.constant 0 : i32
    return %arg0, %c0_i32, %arg1 : i32, i32, i32
  }
  func.func @transform_3(%arg0: i32, %arg1: i32) -> (i32, i32, i32) {
    %c0_i32 = arith.constant 0 : i32
    %c0_i32_0 = arith.constant 0 : i32
    return %arg0, %c0_i32, %arg1 : i32, i32, i32
  }
}

</mosaic_0001>

<bundles_post_ra>
// kernel: tpu_custom_call.1
= control target key start
LH: loop header
LB: loop body
LE: loop exit
PB: predicated region body
PF: predicated region fallthrough
CT: control target
= control target key end

     0   :  { %8 = vsyncpa [#allocation3], 0  ;;  %s698_s0 = inlined_call_operand.vmem [shape: f32[2,8,4], index: 0, kind: input, shape index: {}]   ;;  %s699_s1 = inlined_call_operand.vmem [shape: f32[2,8,1], index: 1, kind: input, shape index: {}]   ;;  %s700_s2 = inlined_call_operand.vmem [shape: f32[2,4,256], index: 2, kind: input, shape index: {}]   ;;  %s701_s3 = inlined_call_operand.hbm [shape: f32[2,8,256], index: 3, kind: output, shape index: {}]  }
   0x1   :  { %10 = vsyncpa [#allocation3 + $0x1], 0  ;;  %s595_s12 = smov 0   ;;  %s597_s13 = smov 0  }
   0x2   :  { %s599_s14 = smov 0   ;;  %s601_s15 = smov 0  }
   0x3   :  { %s603_s16 = smov 0   ;;  %s605_s17 = smov 0  }
   0x4 LB: > { %s416_s18 = sadd.s32 4294967295, %s572_s17   ;;  %s417_s19 = sadd.s32 4294967294, %s572_s17   ;;  %s572_s17 = sphi %s605_s17, %s16_s17   ;;  %s568_s16 = sphi %s603_s16, %s708_s16   ;;  %s564_s15 = sphi %s601_s15, %s707_s15   ;;  %s560_s14 = sphi %s599_s14, %s706_s14   ;;  %s556_s13 = sphi %s597_s13, %s705_s13   ;;  %s552_s12 = sphi %s595_s12, %s704_s12  }
   0x5   : > { %s28_s20 = sadd.s32 1, %s568_s16  ;;  %s117_s21 = sadd.s32 1, %s560_s14 }
   0x6   : > { %p30_p0 = scmp.ge.s32.totalorder %s28_s20, 2  ;;  %p127_p1 = scmp.ne.s32.totalorder %s560_s14, %s556_s13 }
   0x7   : > { %p128_p2 = scmp.eq.s32.totalorder %s416_s18, 1  ;;  %p133_p3 = scmp.ne.s32.totalorder %s556_s13, %s552_s12 }
   0x8   : > { %s710_s20 = smov (%p30_p0, %s28_s20), 0  ;;  %p134_p5 = scmp.eq.s32.totalorder %s417_s19, 1 }
   0x9   : > { %p635_p4 = por %p128_p2, %p127_p1  ;;  %s112_s23 = ssub.s32 %s568_s16, %s710_s20 }
   0xa   : > { %p420_p6 = scmp.ge.s32.totalorder %s572_s17, 1  ;;  %p115_p7 = scmp.eq.s32.totalorder %s112_s23, 0 }
   0xb   : > { %p642_p8 = por %p134_p5, %p133_p3  ;;  %p179_p9 = scmp.lt.s32.totalorder %s572_s17, 3 }
   0xc   : > { %s648_s25 = scalar_select %p115_p7, %s560_s14, %s117_s21  }
   0xd   : > { %p180_p10 = pnand %p420_p6, %p179_p9 }
   0xe   : > { %p215_p11 = scmp.lt.s32.totalorder (!%p180_p10), %s564_s15, 1  ;;  %s212_s10 = sand.u32 (!%p180_p10), 1, %s556_s13  }
   0xf   : > { %183 = sbr.rel (%p180_p10) target bundleno = 166 (0xa6), region = 32  ;;  %s421_s11 = sshll.u32 (!%p180_p10), %s212_s10, 4 }
  0x10   : > { %s436_s18 = sshll.u32 (!%p180_p10), %s564_s15, 4  ;;  %s298_s29 = scalar_lea.sflag (!%p180_p10), [#allocation3], %s212_s10 }
  0x11   : > { %s311_s23 = scalar_lea.hbm (!%p180_p10), %s701_s3, %s436_s18 }
  0x12   : > { %s315_s28 = sshll.u32 (!%p180_p10), %s311_s23, 4  ;;  %s316_s28 = int_to_ptr.hbm [resolvable:$true] %s315_s28 }
  0x14   : > { %v574_v0 = vmov 0   ;;  %s216_s26 = scalar_select %p215_p11, %s564_s15, 1  ;;  %vm250_vm0 = vcmask 1043456   ;;  %vm246_vm1 = vcmask 31744  }
  0x15   : > { %493 = vset.pattern.permute.xlu0 %v574_v0 }
  0x16   : > { %s422_s27 = sshll.u32 %s216_s26, 3  ;;  %s214_s26 = scalar_lea.vmem [#allocation2], %s421_s11 }
  0x17   : > { %s231_s30 = scalar_lea.vmem %s700_s2, %s422_s27  ;;  %s222_s6 = scalar_lea.vmem %s699_s1, %s422_s27 }
  0x18   : > { %v235_v1 = vld [vmem:[%s231_s30] sm:$0xff]  ;;  %s218_s9 = scalar_lea.vmem %s698_s0, %s422_s27  ;;  %s313_s27 = sshll.u32 %s214_s26, 4  ;;  %s314_s27 = int_to_ptr.vmem [resolvable:$true] %s313_s27 }
  0x19   : > { %243 = vst [vmem:[#allocation1] ss:$2 sm:$0xff] %v235_v1  ;;  %v236_v2 = vld [vmem:[%s222_s6] sm:$0xff]  ;;  %s508_s30 = sshra.s32 %s316_s28, 4  ;;  %s514_s6 = scalar_lea.hbm %s701_s3, 32  ;;  %s509_s30 = int_to_ptr.hbm [resolvable:$true] %s508_s30 }
  0x1a   : > { %239 = vperm.xlu0 %493, %v236_v2   ;;  %v234_v3 = vld [vmem:[%s218_s9] sm:$0xff]  ;;  %s510_s15 = scalar_lea.hbm %s509_s30, 16  ;;  %p515_p1 = scmp.lt.s32.totalorder %s509_s30, %s701_s3 }
  0x1b   : > { %p511_p12 = scmp.ne.s32.totalorder %s509_s30, %s510_s15  ;;  %p516_p2 = scmp.lt.s32.totalorder %s514_s6, %s510_s15 }
  0x1d   : > { %p512_p13 = pnand %p511_p12, %p635_p4  ;;  %p517_p3 = por %p516_p2, %p515_p1 }
  0x1f   : > { %p513_p0 = pneg %p512_p13 }
  0x20   : > { %v244_v4 = vld.sshfl [vmem:[#allocation1] sm:$0xff pattern:$0x75316420]  ;;  %v245_v5 = vld.sshfl [vmem:[#allocation1 + $0x8] sm:$0xff pattern:$0x75316420] }
  0x21   : > { %426 = vmatpush.msk.msra.mxu0 %vm250_vm0, %v244_v4  ;;  %428 = vmatpush.msk.msra.mxu1 %vm250_vm0, %v245_v5  ;;  %p518_p5 = pnand %p517_p3, %p513_p0 }
  0x22   : > { %427 = vmatmul.msk.f32.vlgmr.msra.gmra.mxu0 %vm246_vm1, %v234_v3  ;;  %429 = vmatmul.msk.f32.vlgmr.msra.gmra.mxu1 %vm246_vm1, %v234_v3 }
  0x8c   : > { %v240_v6 = vpop.permute.xlu0 %239 }
  0x9f   : > { %v272_v7 = vpop.f32.mrf.mxu0  ;;  %v292_v8 = vpop.f32.mrf.mxu1 }
  0xa0   : > { %v273_v9 = vadd.f32 %v272_v7, %v240_v6  ;;  %v293_v10 = vadd.f32 %v292_v8, %v240_v6 }
  0xa2   : > { %295 = vst [vmem:[%s214_s26] sm:$0xff] %v273_v9 }
  0xa3   : > { %296 = vst [vmem:[%s214_s26 + $0x8] sm:$0xff] %v293_v10 }
  0xa4   : > { %521 = shalt.err (!%p518_p5)
}
  0xa5   : > { %437 = dma.vmem_to_hbm [thread:$0]  (%p635_p4), %s314_s27, 256, %s316_s28, %s298_s29  }
  0xa6 PF: > { %p443_p6 = scmp.ge.s32.totalorder %s572_s17, 2  ;;  %s327_s9 = sand.u32 1, %s552_s12  }
  0xa7   : > { %s328_s10 = scalar_lea.sflag [#allocation3], %s327_s9 }
  0xa8   : > { %p440_p7 = pnand %p443_p6, %p642_p8 }
  0xaa   : > { %p441_p9 = pneg %p440_p7 }
  0xac   : > { %547 = dma.done.wait (%p441_p9), %s328_s10, 256  }
  0xad   : > { %549 = vsyncadd (%p441_p9), %s328_s10, 4294967040  ;;  %s16_s17 = sadd.s32 1, %s572_s17   ;;  %s704_s12 = smov %s556_s13 }
  0xae   : > { %p13_p10 = scmp.ge.s32.totalorder %s16_s17, 4   ;;  %s705_s13 = smov %s560_s14 }
  0xaf   : > { %s706_s14 = smov %s648_s25  ;;  %s707_s15 = smov %s568_s16 }
  0xb0   : > { %s708_s16 = smov %s710_s20  ;;  %15 = sbr.rel (!%p13_p10) target bundleno = 4 (0x4), region = 73 }
  0xb5   :  { %334 = vsyncpa [#allocation3], 1 }
  0xb6   :  { %336 = vsyncpa [#allocation3 + $0x1], 1 }

</bundles_post_ra>
